<compile_context>
chip_gen: v7x
topology: tpu7x:2x2x1
jax: 0.10.0
libtpu: 0.0.40
codegen_flags: <defaults>
</compile_context>

<pallas_src>
import jax
import jax.numpy as jnp
from jax.experimental import pallas as pl
from jax.experimental.pallas import tpu as pltpu


def attention_kernel(x_ref, wqkv_ref, wproj_ref, bproj_ref, o_ref,
                     acc_ref, xbf_ref):
    # x_ref:    (N, C)  f32   (batch dim squeezed, resident across the head axis)
    # wqkv_ref: (3, C, hd) bf16  -- this head's Wq (pre-scaled), Wk, Wv
    # wproj_ref:(hd, C) bf16     -- this head's rows of the output projection
    # bproj_ref:(1, C)  f32
    # o_ref:    (N, C)
    # acc_ref:  (N, C)  f32 scratch (head-accumulated projected output)
    # xbf_ref:  (N, C)  bf16 scratch (x cast once per batch element)
    h = pl.program_id(1)
    last_h = pl.num_programs(1) - 1

    @pl.when(h == 0)
    def _():
        xbf_ref[...] = x_ref[...].astype(jnp.bfloat16)
        acc_ref[...] = jnp.zeros_like(acc_ref)

    x = xbf_ref[...]                                                  # (N, C) bf16

    # Per-head projections (attention scale already folded into the Q weights).
    q = jnp.dot(x, wqkv_ref[0],
                preferred_element_type=jnp.float32).astype(jnp.bfloat16)  # (N, hd)
    k = jnp.dot(x, wqkv_ref[1],
                preferred_element_type=jnp.float32).astype(jnp.bfloat16)  # (N, hd)
    v = jnp.dot(x, wqkv_ref[2],
                preferred_element_type=jnp.float32).astype(jnp.bfloat16)  # (N, hd)

    # Scores (N, N) with f32 accumulation on the MXU.
    s = jax.lax.dot_general(q, k, (((1,), (1,)), ((), ())),
                            preferred_element_type=jnp.float32)

    # Numerically-stable softmax; normalization deferred to the (N, hd) output.
    m = jnp.max(s, axis=-1, keepdims=True)
    e = jnp.exp(s - m)
    l = jnp.sum(e, axis=-1, keepdims=True)

    o = jnp.dot(e.astype(jnp.bfloat16), v,
                preferred_element_type=jnp.float32)                   # (N, hd) f32
    o = o * pl.reciprocal(l, approx=True)

    # This head's contribution to the output projection.
    acc_ref[...] += jnp.dot(o.astype(jnp.bfloat16), wproj_ref[...],
                            preferred_element_type=jnp.float32)       # (N, C)

    @pl.when(h == last_h)
    def _():
        o_ref[...] = (acc_ref[...] + bproj_ref[...]).astype(o_ref.dtype)


def attention(x, w_qkv, w_proj, b_proj, *, num_heads: int):
    B, N, C = x.shape
    assert C % num_heads == 0
    hd = C // num_heads
    scale = float(hd) ** (-0.5)

    # (C, 3C) -> (3, H, C, hd).  The 3C columns are laid out as [s, h, d] exactly as the
    # PyTorch reshape(B, N, 3, H, hd) expects.  Fold the softmax scale into W_q (free,
    # done once offline) and cast weights to bf16 for the MXU.
    w_qkv_r = w_qkv.reshape(C, 3, num_heads, hd).transpose(1, 2, 0, 3)
    w_qkv_r = w_qkv_r * jnp.array([scale, 1.0, 1.0],
                                  dtype=w_qkv_r.dtype).reshape(3, 1, 1, 1)
    w_qkv_bf = w_qkv_r.astype(jnp.bfloat16)

    # (C, C) -> (H, hd, C): per-head row block of the output projection.
    w_proj_bf = w_proj.reshape(num_heads, hd, C).astype(jnp.bfloat16)

    b_proj_2d = b_proj.reshape(1, C).astype(jnp.float32)

    return pl.pallas_call(
        attention_kernel,
        out_shape=jax.ShapeDtypeStruct((B, N, C), x.dtype),
        grid_spec=pltpu.PrefetchScalarGridSpec(
            num_scalar_prefetch=0,
            grid=(B, num_heads),
            in_specs=[
                # x: resident across the head axis (same block index for all h).
                pl.BlockSpec((None, N, C), lambda b, h: (b, 0, 0)),
                # per-head [Wq, Wk, Wv] block, selected on leading axes (no lane slicing).
                pl.BlockSpec((3, None, C, hd), lambda b, h: (0, h, 0, 0)),
                # per-head rows of W_proj.
                pl.BlockSpec((None, hd, C), lambda b, h: (h, 0, 0)),
                # bias (constant).
                pl.BlockSpec((1, C), lambda b, h: (0, 0)),
            ],
            out_specs=pl.BlockSpec((None, N, C), lambda b, h: (b, 0, 0)),
            scratch_shapes=[
                pltpu.VMEM((N, C), jnp.float32),    # head-accumulated output projection
                pltpu.VMEM((N, C), jnp.bfloat16),   # bf16 copy of x, cast once per batch
            ],
        ),
        compiler_params=pltpu.CompilerParams(
            dimension_semantics=("parallel", "arbitrary"),
            vmem_limit_bytes=64 * 1024 * 1024,
        ),
    )(x, w_qkv_bf, w_proj_bf, b_proj_2d)


def attention_ref(x, w_qkv, w_proj, b_proj, *, num_heads: int):
    # Pure-JAX f32 reference mirroring the PyTorch forward exactly.
    B, N, C = x.shape
    hd = C // num_heads
    scale = float(hd) ** (-0.5)
    qkv = jnp.einsum('bnc,cd->bnd', x, w_qkv,
                     precision=jax.lax.Precision.HIGHEST)
    qkv = qkv.reshape(B, N, 3, num_heads, hd).transpose(2, 0, 3, 1, 4)
    q, k, v = qkv[0], qkv[1], qkv[2]                      # (B, H, N, hd)
    attn = jnp.einsum('bhqd,bhkd->bhqk', q, k,
                      precision=jax.lax.Precision.HIGHEST) * scale
    attn = jax.nn.softmax(attn, axis=-1)
    out = jnp.einsum('bhqk,bhkd->bhqd', attn, v,
                     precision=jax.lax.Precision.HIGHEST)
    out = out.transpose(0, 2, 1, 3).reshape(B, N, C)
    return jnp.einsum('bnc,cd->bnd', out, w_proj,
                      precision=jax.lax.Precision.HIGHEST) + b_proj


if __name__ == "__main__":
    B, N, C = 2, 8, 32
    NUM_HEADS = 4

    key = jax.random.PRNGKey(0)
    k_x, k_qkv, k_proj, k_bias = jax.random.split(key, 4)

    x = jax.random.normal(k_x, (B, N, C), dtype=jnp.float32)
    # Deterministic "Linear"-style init (scaled normals), shapes per nn.Linear.
    w_qkv = jax.random.normal(k_qkv, (C, 3 * C), dtype=jnp.float32) * (C ** -0.5)
    w_proj = jax.random.normal(k_proj, (C, C), dtype=jnp.float32) * (C ** -0.5)
    b_proj = jax.random.normal(k_bias, (C,), dtype=jnp.float32) * 0.01

    out = attention(x, w_qkv, w_proj, b_proj, num_heads=NUM_HEADS)
    out = jax.block_until_ready(out)

    ref = attention_ref(x, w_qkv, w_proj, b_proj, num_heads=NUM_HEADS)
    assert out.shape == (B, N, C)
    # bf16 MXU inputs with f32 accumulation -> compare against the f32 reference
    # with bf16-appropriate tolerances.
    assert jnp.allclose(out, ref, atol=5e-2, rtol=5e-2), "mismatch vs reference"

    print("KERNEL_OK")
</pallas_src>

<mosaic_0001>
module attributes {stable_mosaic.version = 11 : i64} {
  func.func @attention_kernel(%arg0: i32, %arg1: i32, %arg2: memref<1x8x32xf32, #tpu.memory_space<vmem>>, %arg3: memref<3x1x32x8xbf16, #tpu.memory_space<vmem>>, %arg4: memref<1x8x32xbf16, #tpu.memory_space<vmem>>, %arg5: memref<1x32xf32, #tpu.memory_space<vmem>>, %arg6: memref<1x8x32xf32, #tpu.memory_space<vmem>>, %arg7: memref<8x32xf32, #tpu.memory_space<vmem>>, %arg8: memref<8x32xbf16, #tpu.memory_space<vmem>>) attributes {dimension_semantics = [#tpu.dimension_semantics<parallel>, #tpu.dimension_semantics<arbitrary>], iteration_bounds = array<i64: 2, 4>, scalar_prefetch = 0 : i64, scratch_operands = 2 : i64, tpu.core_type = #tpu.core_type<tc>, window_params = [{transform_indices = @transform_0, window_bounds = array<i64: 1, 8, 32>}, {transform_indices = @transform_1, window_bounds = array<i64: 3, 1, 32, 8>}, {transform_indices = @transform_2, window_bounds = array<i64: 1, 8, 32>}, {pipeline_mode = #tpu.pipeline_mode<synchronous>, transform_indices = @transform_3, window_bounds = array<i64: 1, 32>}, {transform_indices = @transform_4, window_bounds = array<i64: 1, 8, 32>}]} {
    %c0_i32 = arith.constant 0 : i32
    %0 = arith.cmpi eq, %arg1, %c0_i32 : i32
    %1 = arith.extui %0 : i1 to i32
    %c0_i32_0 = arith.constant 0 : i32
    %2 = arith.cmpi ne, %1, %c0_i32_0 : i32
    scf.if %2 {
      %c0_27 = arith.constant 0 : index
      %c0_28 = arith.constant 0 : index
      %c0_29 = arith.constant 0 : index
      %39 = vector.load %arg2[%c0_27, %c0_28, %c0_29] : memref<1x8x32xf32, #tpu.memory_space<vmem>>, vector<1x8x32xf32>
      %40 = vector.shape_cast %39 : vector<1x8x32xf32> to vector<8x32xf32>
      %41 = arith.truncf %40 : vector<8x32xf32> to vector<8x32xbf16>
      %c0_30 = arith.constant 0 : index
      %c0_31 = arith.constant 0 : index
      %42 = vector.load %arg8[%c0_30, %c0_31] : memref<8x32xbf16, #tpu.memory_space<vmem>>, vector<8x32xbf16>
      tpu.vector_store %arg8[%c0_30, %c0_31], %41 {strides = array<i32>} : memref<8x32xbf16, #tpu.memory_space<vmem>>, vector<8x32xbf16>,
      %cst_32 = arith.constant 0.000000e+00 : f32
      %43 = vector.broadcast %cst_32 : f32 to vector<8x32xf32>
      %c0_33 = arith.constant 0 : index
      %c0_34 = arith.constant 0 : index
      %44 = vector.load %arg7[%c0_33, %c0_34] : memref<8x32xf32, #tpu.memory_space<vmem>>, vector<8x32xf32>
      tpu.vector_store %arg7[%c0_33, %c0_34], %43 {strides = array<i32>} : memref<8x32xf32, #tpu.memory_space<vmem>>, vector<8x32xf32>,
    } else {
    }
    %c0 = arith.constant 0 : index
    %c0_1 = arith.constant 0 : index
    %3 = vector.load %arg8[%c0, %c0_1] : memref<8x32xbf16, #tpu.memory_space<vmem>>, vector<8x32xbf16>
    %c0_2 = arith.constant 0 : index
    %c0_3 = arith.constant 0 : index
    %c0_4 = arith.constant 0 : index
    %c0_5 = arith.constant 0 : index
    %4 = vector.load %arg3[%c0_2, %c0_3, %c0_4, %c0_5] : memref<3x1x32x8xbf16, #tpu.memory_space<vmem>>, vector<1x1x32x8xbf16>
    %5 = vector.shape_cast %4 : vector<1x1x32x8xbf16> to vector<32x8xbf16>
    %cst = arith.constant dense<0.000000e+00> : vector<8x8xf32>
    %6 = tpu.matmul %3, %5, %cst {dimension_numbers = #tpu.dot_dimension_numbers<[1], [0], [0], [1], [0, 0, 1, 1], [], []>} : vector<8x32xbf16>, vector<32x8xbf16>, vector<8x8xf32> -> vector<8x8xf32>
    %7 = arith.truncf %6 : vector<8x8xf32> to vector<8x8xbf16>
    %c1 = arith.constant 1 : index
    %c0_6 = arith.constant 0 : index
    %c0_7 = arith.constant 0 : index
    %c0_8 = arith.constant 0 : index
    %8 = vector.load %arg3[%c1, %c0_6, %c0_7, %c0_8] : memref<3x1x32x8xbf16, #tpu.memory_space<vmem>>, vector<1x1x32x8xbf16>
    %9 = vector.shape_cast %8 : vector<1x1x32x8xbf16> to vector<32x8xbf16>
    %cst_9 = arith.constant dense<0.000000e+00> : vector<8x8xf32>
    %10 = tpu.matmul %3, %9, %cst_9 {dimension_numbers = #tpu.dot_dimension_numbers<[1], [0], [0], [1], [0, 0, 1, 1], [], []>} : vector<8x32xbf16>, vector<32x8xbf16>, vector<8x8xf32> -> vector<8x8xf32>
    %11 = arith.truncf %10 : vector<8x8xf32> to vector<8x8xbf16>
    %c2 = arith.constant 2 : index
    %c0_10 = arith.constant 0 : index
    %c0_11 = arith.constant 0 : index
    %c0_12 = arith.constant 0 : index
    %12 = vector.load %arg3[%c2, %c0_10, %c0_11, %c0_12] : memref<3x1x32x8xbf16, #tpu.memory_space<vmem>>, vector<1x1x32x8xbf16>
    %13 = vector.shape_cast %12 : vector<1x1x32x8xbf16> to vector<32x8xbf16>
    %cst_13 = arith.constant dense<0.000000e+00> : vector<8x8xf32>
    %14 = tpu.matmul %3, %13, %cst_13 {dimension_numbers = #tpu.dot_dimension_numbers<[1], [0], [0], [1], [0, 0, 1, 1], [], []>} : vector<8x32xbf16>, vector<32x8xbf16>, vector<8x8xf32> -> vector<8x8xf32>
    %15 = arith.truncf %14 : vector<8x8xf32> to vector<8x8xbf16>
    %cst_14 = arith.constant dense<0.000000e+00> : vector<8x8xf32>
    %16 = tpu.matmul %7, %11, %cst_14 {dimension_numbers = #tpu.dot_dimension_numbers<[1], [1], [0], [0], [0, 0, 1, 0], [], []>} : vector<8x8xbf16>, vector<8x8xbf16>, vector<8x8xf32> -> vector<8x8xf32>
    %cst_15 = arith.constant dense<0xFF800000> : vector<8xf32>
    %17 = vector.multi_reduction <maximumf>, %16, %cst_15 [1] : vector<8x8xf32> to vector<8xf32>
    %18 = vector.shape_cast %17 : vector<8xf32> to vector<8x1xf32>
    %19 = vector.broadcast %18 : vector<8x1xf32> to vector<8x8xf32>
    %20 = arith.subf %16, %19 : vector<8x8xf32>
    %21 = math.exp %20 : vector<8x8xf32>
    %cst_16 = arith.constant dense<0.000000e+00> : vector<8xf32>
    %22 = vector.multi_reduction <add>, %21, %cst_16 [1] : vector<8x8xf32> to vector<8xf32>
    %23 = vector.shape_cast %22 : vector<8xf32> to vector<8x1xf32>
    %24 = arith.truncf %21 : vector<8x8xf32> to vector<8x8xbf16>
    %cst_17 = arith.constant dense<0.000000e+00> : vector<8x8xf32>
    %25 = tpu.matmul %24, %15, %cst_17 {dimension_numbers = #tpu.dot_dimension_numbers<[1], [0], [0], [1], [0, 0, 1, 1], [], []>} : vector<8x8xbf16>, vector<8x8xbf16>, vector<8x8xf32> -> vector<8x8xf32>
    %26 = tpu.reciprocal %23 {approx = true} : vector<8x1xf32> -> vector<8x1xf32>
    %27 = vector.broadcast %26 : vector<8x1xf32> to vector<8x8xf32>
    %28 = arith.mulf %25, %27 : vector<8x8xf32>
    %c0_18 = arith.constant 0 : index
    %c0_19 = arith.constant 0 : index
    %29 = vector.load %arg7[%c0_18, %c0_19] : memref<8x32xf32, #tpu.memory_space<vmem>>, vector<8x32xf32>
    %30 = arith.truncf %28 : vector<8x8xf32> to vector<8x8xbf16>
    %c0_20 = arith.constant 0 : index
    %c0_21 = arith.constant 0 : index
    %c0_22 = arith.constant 0 : index
    %31 = vector.load %arg4[%c0_20, %c0_21, %c0_22] : memref<1x8x32xbf16, #tpu.memory_space<vmem>>, vector<1x8x32xbf16>
    %32 = vector.shape_cast %31 : vector<1x8x32xbf16> to vector<8x32xbf16>
    %cst_23 = arith.constant dense<0.000000e+00> : vector<8x32xf32>
    %33 = tpu.matmul %30, %32, %cst_23 {dimension_numbers = #tpu.dot_dimension_numbers<[1], [0], [0], [1], [0, 0, 1, 1], [], []>} : vector<8x8xbf16>, vector<8x32xbf16>, vector<8x32xf32> -> vector<8x32xf32>
    %34 = arith.addf %29, %33 : vector<8x32xf32>
    %c0_24 = arith.constant 0 : index
    %c0_25 = arith.constant 0 : index
    %35 = vector.load %arg7[%c0_24, %c0_25] : memref<8x32xf32, #tpu.memory_space<vmem>>, vector<8x32xf32>
    tpu.vector_store %arg7[%c0_24, %c0_25], %34 {strides = array<i32>} : memref<8x32xf32, #tpu.memory_space<vmem>>, vector<8x32xf32>,
    %c3_i32 = arith.constant 3 : i32
    %36 = arith.cmpi eq, %arg1, %c3_i32 : i32
    %37 = arith.extui %36 : i1 to i32
    %c0_i32_26 = arith.constant 0 : i32
    %38 = arith.cmpi ne, %37, %c0_i32_26 : i32
    scf.if %38 {
      %c0_27 = arith.constant 0 : index
      %c0_28 = arith.constant 0 : index
      %39 = vector.load %arg7[%c0_27, %c0_28] : memref<8x32xf32, #tpu.memory_space<vmem>>, vector<8x32xf32>
      %c0_29 = arith.constant 0 : index
      %c0_30 = arith.constant 0 : index
      %40 = vector.load %arg5[%c0_29, %c0_30] : memref<1x32xf32, #tpu.memory_space<vmem>>, vector<1x32xf32>
      %41 = vector.broadcast %40 : vector<1x32xf32> to vector<8x32xf32>
      %42 = arith.addf %39, %41 : vector<8x32xf32>
      %c0_31 = arith.constant 0 : index
      %c0_32 = arith.constant 0 : index
      %c0_33 = arith.constant 0 : index
      %43 = vector.load %arg6[%c0_31, %c0_32, %c0_33] : memref<1x8x32xf32, #tpu.memory_space<vmem>>, vector<1x8x32xf32>
      %44 = vector.shape_cast %43 : vector<1x8x32xf32> to vector<8x32xf32>
      %45 = vector.shape_cast %42 : vector<8x32xf32> to vector<1x8x32xf32>
      tpu.vector_store %arg6[%c0_31, %c0_32, %c0_33], %45 {strides = array<i32>} : memref<1x8x32xf32, #tpu.memory_space<vmem>>, vector<1x8x32xf32>,
    } else {
    }
    return
  }
  func.func @transform_0(%arg0: i32, %arg1: i32) -> (i32, i32, i32) {
    %c0_i32 = arith.constant 0 : i32
    %c0_i32_0 = arith.constant 0 : i32
    %c0_i32_1 = arith.constant 0 : i32
    return %arg0, %c0_i32, %c0_i32_0 : i32, i32, i32
  }
  func.func @transform_1(%arg0: i32, %arg1: i32) -> (i32, i32, i32, i32) {
    %c0_i32 = arith.constant 0 : i32
    %c0_i32_0 = arith.constant 0 : i32
    %c0_i32_1 = arith.constant 0 : i32
    %c0_i32_2 = arith.constant 0 : i32
    return %c0_i32, %arg1, %c0_i32_0, %c0_i32_1 : i32, i32, i32, i32
  }
  func.func @transform_2(%arg0: i32, %arg1: i32) -> (i32, i32, i32) {
    %c0_i32 = arith.constant 0 : i32
    %c0_i32_0 = arith.constant 0 : i32
    %c0_i32_1 = arith.constant 0 : i32
    return %arg1, %c0_i32, %c0_i32_0 : i32, i32, i32
  }
  func.func @transform_3(%arg0: i32, %arg1: i32) -> (i32, i32) {
    %c0_i32 = arith.constant 0 : i32
    %c0_i32_0 = arith.constant 0 : i32
    %c0_i32_1 = arith.constant 0 : i32
    return %c0_i32, %c0_i32_0 : i32, i32
  }
  func.func @transform_4(%arg0: i32, %arg1: i32) -> (i32, i32, i32) {
    %c0_i32 = arith.constant 0 : i32
    %c0_i32_0 = arith.constant 0 : i32
    %c0_i32_1 = arith.constant 0 : i32
    return %arg0, %c0_i32, %c0_i32_0 : i32, i32, i32
  }
}

</mosaic_0001>

<bundles_post_ra>
// kernel: tpu_custom_call.1
= control target key start
LH: loop header
LB: loop body
LE: loop exit
PB: predicated region body
PF: predicated region fallthrough
CT: control target
= control target key end

     0   :  { %s1697_s0 = inlined_call_operand.hbm [shape: f32[2,8,32], index: 0, kind: input, shape index: {}]   ;;  %s1698_s1 = inlined_call_operand.hbm [shape: bf16[3,4,32,8], index: 1, kind: input, shape index: {}]   ;;  %s1699_s2 = inlined_call_operand.hbm [shape: bf16[4,8,32], index: 2, kind: input, shape index: {}]   ;;  %s1700_s3 = inlined_call_operand.hbm [shape: f32[1,32], index: 3, kind: input, shape index: {}]   ;;  %s1701_s4 = inlined_call_operand.hbm [shape: f32[2,8,32], index: 4, kind: output, shape index: {}]  }
   0x1   :  { %1717 = sst [smem:[#allocation28_spill]] %s1697_s0 }
   0x2   :  { %1718 = sst [smem:[#allocation29_spill]] %s1698_s1 }
   0x3   :  { %1719 = sst [smem:[#allocation30_spill]] %s1700_s3 }
   0x4   :  { %9 = vsyncpa [#allocation5], 0 }
   0x5   :  { %11 = vsyncpa [#allocation5 + $0x1], 0 }
   0x6   :  { %12 = vsyncpa [#allocation8], 0 }
   0x7   :  { %14 = vsyncpa [#allocation8 + $0x1], 0 }
   0x8   :  { %15 = vsyncpa [#allocation11], 0 }
   0x9   :  { %16 = vsyncpa [#allocation6], 0 }
   0xa   :  { %18 = vsyncpa [#allocation6 + $0x1], 0  ;;  %s1340_s15 = smov 0   ;;  %s1342_s16 = smov 0  }
   0xb   :  { %s1344_s17 = smov 0   ;;  %s1346_s18 = smov 0  }
   0xc   :  { %s1348_s19 = smov 0   ;;  %s1350_s20 = smov 0  }
   0xd   :  { %s1352_s21 = smov 0   ;;  %s1354_s22 = smov 0  }
   0xe   :  { %s1356_s23 = smov 0   ;;  %s1358_s24 = smov 0  }
   0xf   :  { %s1360_s25 = smov 0  }
  0x10 LB: > { %1720 = sst [smem:[#allocation20_spill]] %s1273_s18  ;;  %s1396_s26 = sadd.s32 4294967295, %s1301_s25   ;;  %s1301_s25 = sphi %s1360_s25, %s24_s25   ;;  %s1297_s24 = sphi %s1358_s24, %s1765_s24   ;;  %s1293_s23 = sphi %s1356_s23, %s1764_s23   ;;  %s1289_s22 = sphi %s1354_s22, %s1755_s22   ;;  %s1285_s21 = sphi %s1352_s21, %s1763_s21   ;;  %s1281_s20 = sphi %s1350_s20, %s1754_s20   ;;  %s1277_s19 = sphi %s1348_s19, %s1762_s19   ;;  %s1273_s18 = sphi %s1346_s18, %s1761_s18   ;;  %s1269_s17 = sphi %s1344_s17, %s1760_s17   ;;  %s1265_s16 = sphi %s1342_s16, %s1759_s16   ;;  %s1261_s15 = sphi %s1340_s15, %s1758_s15  }
  0x11   : > { %1721 = sst [smem:[#allocation21_spill]] %s1281_s20  ;;  %s846_s27 = sadd.s32 4294967294, %s1301_s25  }
  0x12   : > { %1722 = sst [smem:[#allocation22_spill]] %s1297_s24  ;;  %s33_s28 = sadd.s32 1, %s1293_s23 }
  0x13   : > { %s36_s29 = sadd.s32 1, %s1297_s24  ;;  %p34_p0 = scmp.ge.s32.totalorder %s33_s28, 4 }
  0x14   : > { %s43_s30 = sadd.s32 1, %s1281_s20  ;;  %p1703_p1 = scmp.ne.s32.totalorder %s1281_s20, %s1277_s19 }
  0x15   : > { %p51_p2 = scmp.eq.s32.totalorder %s1301_s25, 0  ;;  %s1767_s28 = smov (%p34_p0, %s33_s28), 0 }
  0x16   : > { %1723 = sst [smem:[#allocation23_spill]] %s1767_s28  ;;  %s1769_s29 = smov (!%p34_p0, %s36_s29), %s1297_s24 }
  0x17   : > { %p1413_p3 = por %p51_p2, %p1703_p1  ;;  %p1702_p4 = scmp.ne.s32.totalorder %s1277_s19, %s1273_s18 }
  0x18   : > { %p38_p5 = scmp.ge.s32.totalorder %s1769_s29, 2  ;;  %p1710_p6 = scmp.eq.s32.totalorder %s1396_s26, 0 }
  0x19   : > { %s1724_s5 = scalar_select %p1413_p3, 1, 0 }
  0x1a   : > { %s66_s6 = ssub.s32 %s1293_s23, %s1767_s28  ;;  %s69_s7 = sadd.s32 1, %s1269_s17 }
  0x1b   : > { %s1771_s29 = smov (%p38_p5, %s1769_s29), 0  ;;  %p1430_p7 = por %p1710_p6, %p1702_p4 }
  0x1c   : > { %1725 = sst [smem:[#allocation24_spill]] %s1771_s29  ;;  %p67_p8 = scmp.eq.s32.totalorder %s66_s6, 0 }
  0x1d   : > { %s1726_s8 = scalar_select %p1430_p7, 1, 0 }
  0x1e   : > { %s40_s9 = ssub.s32 %s1297_s24, %s1771_s29  ;;  %p76_p9 = scmp.ne.s32.totalorder %s1269_s17, %s1265_s16 }
  0x1f   : > { %p41_p10 = scmp.eq.s32.totalorder %s40_s9, 0  ;;  %p82_p11 = scmp.ne.s32.totalorder %s1265_s16, %s1261_s15 }
  0x20   : > { %s1441_s10 = scalar_select %p67_p8, %s1269_s17, %s69_s7  }
  0x21   : > { %s1444_s11 = scalar_select %p41_p10, %s1281_s20, %s43_s30  }
  0x22   : > { %1727 = sst [smem:[#allocation25_spill]] %s1441_s10  ;;  %p1448_p12 = por %p76_p9, %p51_p2 }
  0x23   : > { %1728 = sst [smem:[#allocation26_spill]] %s1444_s11  ;;  %p1454_p13 = por %p82_p11, %p1710_p6 }
  0x24   : > { %s1729_s12 = scalar_select %p1448_p12, 1, 0 }
  0x25   : > { %s1730_s13 = scalar_select %p1454_p13, 1, 0 }
  0x26   : > { %p153_p0 = scmp.eq.s32.totalorder %s1396_s26, 7  ;;  %p159_p5 = scmp.eq.s32.totalorder %s846_s27, 7 }
  0x27   : > { %p847_p4 = scmp.ge.s32.totalorder %s1301_s25, 1  ;;  %p166_p1 = scmp.lt.s32.totalorder %s1301_s25, 9 }
  0x28   : > { %p1731_p7 = scmp.ne.s32.totalorder %s1281_s20, %s1277_s19  ;;  %p1733_p8 = scmp.ne.s32.totalorder %s1277_s19, %s1273_s18 }
  0x29   : > { %p1475_p2 = pnand %p847_p4, %p166_p1  ;;  %s1303_s27 = smov [#allocation10]  }
  0x2a   : > { %p1464_p3 = por %p153_p0, %p1731_p7  ;;  %p1471_p10 = por %p159_p5, %p1733_p8 }
  0x2b   : > { %s1736_s30 = scalar_select %p1475_p2, 1, 0 }
  0x2c   : > { %s1732_s14 = scalar_select %p1464_p3, 1, 0 }
  0x2d   : > { %s1734_s15 = scalar_select %p1471_p10, 1, 0 }
  0x2e   : > { %p969_p9 = pneg %p1475_p2  ;;  %s179_s6 = sshll.u32 %s1303_s27, 4  ;;  %s180_s6 = int_to_ptr.vmem [resolvable:$true] %s179_s6 }
  0x2f   : > { %1735 = sst [smem:[#allocation27_spill]] %s1734_s15 }
  0x30   : > { %p1483_p7 = pnand %p969_p9, %p1710_p6  ;;  %s1738_s3 = sld [smem:[#allocation30_spill]] }
  0x32   : > { %p1089_p4 = pneg %p1483_p7 }
  0x36   : > { %s1087_s28 = scalar_lea.hbm %s1738_s3, 16 }
  0x37   : > { %p1088_p1 = scmp.ne.s32.totalorder %s1738_s3, %s1087_s28  ;;  %p1094_p5 = scmp.lt.u32.totalorder %s1087_s28, %s1738_s3 }
  0x39   : > { %p1090_p11 = pnand %p1089_p4, %p1088_p1 }
  0x3b   : > { %p1091_p0 = pneg %p1090_p11 }
  0x3d   : > { %p1096_p8 = pnand %p1094_p5, %p1091_p0 }
  0x3f   : > { %1099 = shalt.err (!%p1096_p8)
}
  0x40   : > { %s1100_s18 = scalar_lea.vmem %s180_s6, 16  ;;  %s1107_s29 = scalar_lea.vmem %s180_s6, 32 }
  0x41   : > { %p1101_p9 = scmp.ne.s32.totalorder %s180_s6, %s1100_s18  ;;  %p1108_p3 = scmp.lt.s32.totalorder %s180_s6, %s180_s6 }
  0x42   : > { %p1109_p13 = scmp.lt.s32.totalorder %s1107_s29, %s1100_s18 }
  0x43   : > { %p1103_p6 = pnand %p1101_p9, %p1089_p4 }
  0x44   : > { %p1110_p2 = por %p1109_p13, %p1108_p3 }
  0x45   : > { %p1104_p10 = pneg %p1103_p6 }
  0x47   : > { %p1111_p12 = pnand %p1110_p2, %p1104_p10 }
  0x49   : > { %1114 = shalt.err (!%p1111_p12)
}
  0x4a   : > { %972 = dma.hbm_to_vmem [thread:$0]  (!%p1483_p7), %s1738_s3, 16, %s180_s6, [#allocation11]  }
  0x4b   : > { %p849_p1 = scmp.ge.s32.totalorder %s1301_s25, 8 }
  0x4c   : > { %s190_s28 = sand.u32 (!%p849_p1), 1, %s1281_s20   ;;  %s851_s15 = sshll.u32 (!%p849_p1), %s1297_s24, 7 }
  0x4d   : > { %186 = sbr.rel (%p849_p1) target bundleno = 144 (0x90), region = 20  ;;  %s850_s9 = sshll.u32 (!%p849_p1), %s190_s28, 3 }
  0x4e   : > { %s1739_s0 = sld [smem:[#allocation28_spill]] (!%p849_p1)  ;;  %s194_s7 = scalar_lea.vmem (!%p849_p1), [#allocation4], %s850_s9 }
  0x4f   : > { %s201_s6 = sshll.u32 (!%p849_p1), %s194_s7, 4  ;;  %s191_s10 = scalar_lea.sflag (!%p849_p1), [#allocation5], %s190_s28  ;;  %s202_s6 = int_to_ptr.vmem [resolvable:$true] %s201_s6 }
  0x50   : > { %p1740_p6 = scmp.ne.s32.totalorder (!%p849_p1), %s1724_s5, 0 }
  0x54   : > { %s1509_s29 = scalar_lea.hbm %s1739_s0, %s851_s15  ;;  %s1119_s20 = scalar_lea.hbm %s1739_s0, 256 }
  0x55   : > { %s1115_s11 = scalar_lea.hbm %s1509_s29, 128  ;;  %p1120_p10 = scmp.lt.u32.totalorder %s1509_s29, %s1739_s0 }
  0x56   : > { %p1116_p3 = scmp.ne.s32.totalorder %s1509_s29, %s1115_s11  ;;  %p1121_p2 = scmp.lt.u32.totalorder %s1119_s20, %s1115_s11 }
  0x57   : > { %p1123_p4 = scmp.lt.u32.totalorder %s1115_s11, %s1509_s29 }
  0x58   : > { %p1117_p12 = pnand %p1116_p3, %p1740_p6  ;;  %p1122_p7 = por %p1121_p2, %p1120_p10 }
  0x5a   : > { %p1118_p13 = pneg %p1117_p12  ;;  %p1124_p11 = por %p1123_p4, %p1122_p7 }
  0x5c   : > { %p1125_p0 = pnand %p1124_p11, %p1118_p13 }
  0x5e   : > { %1128 = shalt.err (!%p1125_p0)
}
  0x5f   : > { %s1129_s28 = scalar_lea.vmem %s202_s6, 128  ;;  %s1304_s9 = smov [#allocation4]  }
  0x60   : > { %p1130_p5 = scmp.ne.s32.totalorder %s202_s6, %s1129_s28  ;;  %s1133_s18 = sshll.u32 %s1304_s9, 4  ;;  %s1134_s18 = int_to_ptr.vmem [resolvable:$false] %s1133_s18 }
  0x61   : > { %s1135_s3 = scalar_lea.vmem %s1134_s18, 256  ;;  %p1136_p1 = scmp.lt.s32.totalorder %s202_s6, %s1134_s18 }
  0x62   : > { %p1131_p8 = pnand %p1130_p5, %p1740_p6  ;;  %p1137_p3 = scmp.lt.s32.totalorder %s1135_s3, %s1129_s28 }
  0x64   : > { %p1132_p9 = pneg %p1131_p8  ;;  %p1138_p12 = por %p1137_p3, %p1136_p1 }
  0x66   : > { %p1139_p2 = pnand %p1138_p12, %p1132_p9 }
  0x68   : > { %1142 = shalt.err (!%p1139_p2)
}
  0x69   : > { %952 = dma.hbm_to_vmem [thread:$0]  (%p1740_p6), %s1509_s29, 128, %s202_s6, %s191_s10  }
  0x6a   : > { %s208_s20 = sand.u32 1, %s1301_s25   ;;  %s210_s24 = sand.u32 1, %s1269_s17  }
  0x6b   : > { %s948_s7 = smul.u32 48, %s210_s24  ;;  %p1741_p13 = scmp.ne.s32.totalorder %s1729_s12, 0 }
  0x6c   : > { %s890_s27 = sshll.u32 %s1293_s23, 8  ;;  %s1305_s15 = smov 1024  }
  0x6d   : > { %s953_s11 = scalar_select %p1741_p13, [#allocation0], [#allocation15] }
  0x6e   : > { %954 = sst [smem:[#allocation14]] (%p1741_p13), %s1305_s15  ;;  %s212_s29 = scalar_lea.vmem [#allocation7], %s948_s7 }
  0x6f   : > { %s223_s5 = sld [smem:[%s953_s11]]   ;;  %s231_s6 = sshll.u32 %s212_s29, 4  ;;  %s232_s6 = int_to_ptr.vmem [resolvable:$true] %s231_s6 }
  0x70   : > { %s1306_s10 = smov 256   ;;  %s1742_s1 = sld [smem:[#allocation29_spill]] }
  0x71   : > { %955 = sst [smem:[#allocation14 + $0x1]] (%p1741_p13), %s1306_s10  ;;  %s1307_s3 = smov 4  }
  0x72   : > { %956 = sst [smem:[#allocation14 + $0x2]] (%p1741_p13), %s1307_s3  ;;  %s1308_s0 = smov 64  }
  0x73   : > { %957 = sst [smem:[#allocation14 + $0x3]] (%p1741_p13), %s1308_s0  ;;  %s1548_s15 = scalar_lea.sflag [#allocation8], %s208_s20 }
  0x74   : > { %958 = sst [smem:[#allocation14 + $0x4]] (%p1741_p13), %s1308_s0  ;;  %s1309_s29 = smov [#allocation13]  }
  0x75   : > { %s854_s11 = sshll.u32 %s223_s5, 26  ;;  %959 = sst [smem:[#allocation14 + $0x5]] (%p1741_p13), %s1307_s3 }
  0x76   : > { %s218_s18 = scalar_lea.hbm %s1742_s1, %s890_s27  ;;  %s855_s7 = sadd.s32 134217728, %s854_s11 }
  0x77   : > { %960 = dma.general (%p1741_p13), %s218_s18, 768, %s232_s6, %s1548_s15, %s1309_s29, [#allocation14], %s855_s7, 0  }
  0x78   : > { %s856_s27 = sshll.u32 %s210_s24, 2  ;;  %s857_s10 = sshll.u32 %s1293_s23, 6 }
  0x79   : > { %s1557_s1 = scalar_lea.hbm %s1699_s2, %s857_s10  ;;  %s258_s0 = scalar_lea.vmem [#allocation9], %s856_s27 }
  0x7a   : > { %s265_s20 = sshll.u32 %s258_s0, 4  ;;  %s1143_s5 = scalar_lea.hbm %s1557_s1, 64  ;;  %s266_s20 = int_to_ptr.vmem [resolvable:$true] %s265_s20 }
  0x7b   : > { %p1144_p6 = scmp.ne.s32.totalorder %s1557_s1, %s1143_s5  ;;  %s1147_s18 = scalar_lea.hbm %s1699_s2, 256 }
  0x7c   : > { %p1148_p4 = scmp.lt.u32.totalorder %s1557_s1, %s1699_s2  ;;  %p1149_p11 = scmp.lt.u32.totalorder %s1147_s18, %s1143_s5 }
  0x7d   : > { %p1145_p10 = pnand %p1144_p6, %p1741_p13  ;;  %p1151_p5 = scmp.lt.u32.totalorder %s1143_s5, %s1557_s1 }
  0x7e   : > { %p1150_p0 = por %p1149_p11, %p1148_p4 }
  0x7f   : > { %p1146_p7 = pneg %p1145_p10 }
  0x80   : > { %p1152_p8 = por %p1151_p5, %p1150_p0 }
  0x82   : > { %p1153_p9 = pnand %p1152_p8, %p1146_p7 }
  0x84   : > { %1156 = shalt.err (!%p1153_p9)
}
  0x85   : > { %s1157_s7 = scalar_lea.vmem %s266_s20, 64  ;;  %s1310_s29 = smov [#allocation9]  }
  0x86   : > { %p1158_p1 = scmp.ne.s32.totalorder %s266_s20, %s1157_s7  ;;  %s1161_s27 = sshll.u32 %s1310_s29, 4  ;;  %s1162_s27 = int_to_ptr.vmem [resolvable:$false] %s1161_s27 }
  0x87   : > { %s1163_s10 = scalar_lea.vmem %s1162_s27, 128  ;;  %p1164_p2 = scmp.lt.s32.totalorder %s266_s20, %s1162_s27 }
  0x88   : > { %p1159_p3 = pnand %p1158_p1, %p1741_p13  ;;  %p1165_p6 = scmp.lt.s32.totalorder %s1163_s10, %s1157_s7 }
  0x8a   : > { %p1160_p12 = pneg %p1159_p3  ;;  %p1166_p10 = por %p1165_p6, %p1164_p2 }
  0x8c   : > { %p1167_p4 = pnand %p1166_p10, %p1160_p12 }
  0x8e   : > { %1170 = shalt.err (!%p1167_p4)
}
  0x8f   : > { %961 = dma.hbm_to_vmem [thread:$0]  (%p1741_p13), %s1557_s1, 64, %s266_s20, %s1548_s15  }
  0x90 PF: > { %p1743_p7 = scmp.ne.s32.totalorder %s1736_s30, 0 }
  0x91   : > { %s1580_s28 = sand.u32 (!%p1743_p7), 1, %s1277_s19   ;;  %p1744_p11 = scmp.ne.s32.totalorder (!%p1743_p7), %s1726_s8, 0 }
  0x92   : > { %274 = sbr.rel (%p1743_p7) target bundleno = 1240 (0x4d8), region = 36  ;;  %s859_s9 = sshll.u32 (!%p1743_p7), %s1580_s28, 3 }
  0x93   : > { %s277_s0 = scalar_lea.sflag (!%p1743_p7), [#allocation5], %s1580_s28  ;;  %s280_s5 = scalar_lea.vmem (!%p1743_p7), [#allocation4], %s859_s9 }
  0x99   : > { %1244 = dma.done.wait (%p1744_p11), %s277_s0, 128  }
  0x9a   : > { %1246 = vsyncadd (%p1744_p11), %s277_s0, 4294967168  ;;  %s285_s1 = sand.u32 1, %s1396_s26   ;;  %s287_s12 = sand.u32 1, %s1265_s16  }
  0x9b   : > { %s949_s30 = smul.u32 48, %s287_s12  ;;  %s286_s15 = scalar_lea.sflag [#allocation8], %s285_s1 }
  0x9c   : > { %p1745_p13 = scmp.ne.s32.totalorder %s1730_s13, 0 }
  0x9d   : > { %s1590_s20 = scalar_lea.vmem [#allocation7], %s949_s30 }
  0x9e   : > { %1248 = dma.done.wait (%p1745_p13), %s286_s15, 832  }
  0x9f   : > { %1250 = vsyncadd (%p1745_p13), %s286_s15, 4294966464  ;;  %s1596_s24 = sshll.u32 %s287_s12, 2  ;;  %p1746_p0 = scmp.eq.s32.totalorder %s1396_s26, 0 }
  0xa0   : > { %s298_s8 = scalar_lea.vmem [#allocation9], %s1596_s24 }
  0xa1   : > { %1252 = dma.done.wait (%p1746_p0), [#allocation11], 16   ;;  %p1747_p5 = pmov %p1746_p0 }
  0xa2   : > { %s1603_s6 = scalar_lea.vmem [#allocation12], %s859_s9  ;;  %p863_p8 = scmp.ne.s32.totalorder %s1285_s21, 0 }
  0xa3   : > { %1254 = vsyncadd (%p1747_p5), [#allocation11], 4294967280  ;;  %v342_v0 = vld [vmem:[%s280_s5] sm:$0xff] (!%p863_p8)  ;;  %vm344_vm0 = vcmask (!%p863_p8), 257024   ;;  %vm346_vm1 = vcmask (!%p863_p8), 261120   ;;  %v1311_v2 = vmov (!%p863_p8), 0.0  }
  0xa4   : > { %341 = sbr.rel (%p863_p8) target bundleno = 171 (0xab), region = 56  ;;  %v343_v1 = vpack.c.bf16 (!%p863_p8), %v342_v0, %v342_v0  ;;  %347 = vst.msk [vmem:[#allocation2] sm:$0xff] (!%p863_p8), %vm346_vm1, %v1311_v2 }
  0xa6   : > { %345 = vst.msk [vmem:[#allocation3] sm:$0xf] (!%p863_p8), %vm344_vm0, %v343_v1 }
  0xab PF: > { %v1077_v3 = vld [vmem:[%s1590_s20 + $0x10] sm:$0xff]   ;;  %v1312_v4 = vmov 0.0   ;;  %v1078_v5 = vld [vmem:[%s1590_s20 + $0x18] sm:$0xff]   ;;  %v1079_v6 = vld [vmem:[%s1590_s20] sm:$0xff]   ;;  %vm1313_vm2 = vmmov 0   ;;  %vm365_vm3 = vcmask 261120  }
  0xac   : > { %914 = vmatprep.subr.bf16.mxu1 %v1312_v4  ;;  %906 = vmatprep.subr.bf16.mxu0 %v1312_v4  ;;  %v1080_v7 = vld [vmem:[%s1590_s20 + $0x8] sm:$0xff]   ;;  %v1081_v9 = vld [vmem:[%s1590_s20 + $0x20] sm:$0xff]   ;;  %vm526_vm4 = vcmask 64512   ;;  %vm586_vm5 = vcmask 1043456   ;;  %p884_p9 = scmp.ne.s32.totalorder %s1285_s21, 3 }
  0xad   : > { %915 = vmatpush3.bf16.msra.mxu1 %v1077_v3  ;;  %918 = vmatprep.mubr.msk.bf16.mxu1 %vm1313_vm2, %v1312_v4  ;;  %v348_v8 = vld [vmem:[#allocation3] sm:$0xf]  ;;  %v634_v39 = vld [vmem:[%s298_s8] sm:$0xf]  ;;  %v885_v56 = vld [vmem:[#allocation10] ss:$0 sm:$0xff] (!%p884_p9) }
  0xae   : > { %916 = vmatprep.subr.bf16.mxu1 %v1312_v4  ;;  %910 = vmatprep.mubr.msk.bf16.mxu0 %vm1313_vm2, %v1312_v4  ;;  %v1082_v10 = vld [vmem:[%s1590_s20 + $0x28] sm:$0xff]   ;;  %v639_v40 = vsel %vm586_vm5, %v634_v39, 0 }
  0xaf   : > { %907 = vmatpush3.bf16.msra.mxu0 %v1079_v6  ;;  %v632_v49 = vld [vmem:[#allocation2] sm:$0xff] }
  0xb0   : > { %908 = vmatprep.subr.bf16.mxu0 %v1312_v4 }
  0xb1   : > { %917 = vmatpush3.bf16.msra.mxu1 %v1078_v5 }
  0xb2   : > { %930 = vmatprep.subr.bf16.mxu1 %v1312_v4 }
  0xb3   : > { %909 = vmatpush3.bf16.msra.mxu0 %v1080_v7 }
  0xb4   : > { %919 = vmatmul.mubr.msk.bf16.vlgmr.msra.gmra.mrb[0].mxu1 %vm365_vm3, %v348_v8  ;;  %922 = vmatprep.subr.bf16.mxu0 %v1312_v4 }
  0xb5   : > { %932 = vmatprep.mubr.msk.bf16.mxu1 %vm1313_vm2, %v1312_v4 }
  0xb6   : > { %911 = vmatmul.mubr.msk.bf16.vlgmr.msra.gmra.mrb[0].mxu0 %vm365_vm3, %v348_v8 }
  0xb7   : > { %926 = vmatprep.mubr.msk.bf16.mxu0 %vm1313_vm2, %v1312_v4  ;;  %923 = vmatpush3.bf16.msra.mxu0 %v1081_v9 }
  0xb8   : > { %924 = vmatprep.subr.bf16.mxu0 %v1312_v4 }
  0xbb   : > { %925 = vmatpush3.bf16.msra.mxu0 %v1082_v10 }
  0xbc   : > { %936 = vmatprep.subr.bf16.mxu0 %v1312_v4 }
  0xbe   : > { %927 = vmatmul.mubr.msk.bf16.vlgmr.msra.gmra.mrb[4].mxu0 %vm365_vm3, %v348_v8 }
  0xbf   : > { %938 = vmatprep.mubr.msk.bf16.mxu0 %vm1313_vm2, %v1312_v4 }
 0x187   : > { %v461_v11 = vpop.f32.mrb[0].mxu1 }
 0x188   : > { %v467_v12 = vpack.c.bf16 %v461_v11, %v461_v11  ;;  %v920_v13 = vpop.f32.mrb[1].mxu1 }
 0x189   : > { %v464_v14 = vpop.f32.mrb[2].mxu1  ;;  %v403_v15 = vpop.f32.mrb[0].mxu0 }
 0x18a   : > { %v531_v16 = vsel %vm526_vm4, %v467_v12, 0  ;;  %v921_v17 = vpop.f32.mrb[3].mxu1  ;;  %v912_v18 = vpop.f32.mrb[1].mxu0  ;;  %v409_v21 = vpack.c.bf16 %v403_v15, %v403_v15 }
 0x18b   : > { %931 = vmatpush3.bf16.xpose.msra.mxu1 %v531_v16  ;;  %v406_v19 = vpop.f32.mrb[2].mxu0 }
 0x18c   : > { %v913_v20 = vpop.f32.mrb[3].mxu0  ;;  %942 = vmatprep.subr.bf16.mxu1 %v1312_v4 }
 0x191   : > { %v519_v27 = vpop.f32.mrb[4].mxu0 }
 0x192   : > { %933 = vmatmul.mubr.msk.bf16.vlgmr.msra.gmra.mrb[4].mxu1 %vm526_vm4, %v409_v21  ;;  %v525_v28 = vpack.c.bf16 %v519_v27, %v519_v27  ;;  %v928_v29 = vpop.f32.mrb[5].mxu0 }
 0x193   : > { %944 = vmatprep.mubr.msk.bf16.mxu1 %vm1313_vm2, %v1312_v4  ;;  %v522_v30 = vpop.f32.mrb[6].mxu0  ;;  %943 = vmatpush3.bf16.msra.mxu1 %v639_v40 }
 0x194   : > { %v588_v31 = vsel %vm586_vm5, %v525_v28, 0  ;;  %v929_v32 = vpop.f32.mrb[7].mxu0 }
 0x195   : > { %937 = vmatpush3.bf16.msra.mxu0 %v588_v31 }
 0x265   : > { %v567_v22 = vpop.f32.mrb[4].mxu1 }
 0x266   : > { %v934_v23 = vpop.f32.mrb[5].mxu1  ;;  %v573_v24 = vsel %vm526_vm4, %v567_v22, -inf }
 0x267   : > { %574 = vmax.xlane.f32.xlu0 %v573_v24  ;;  %v570_v25 = vpop.f32.mrb[6].mxu1 }
 0x268   : > { %v935_v26 = vpop.f32.mrb[7].mxu1 }
 0x2f4   : > { %v575_v33 = vpop.xlane.xlu0 %574 }
 0x2f5   : > { %v576_v34 = vsub.f32 %v567_v22, %v575_v33 }
 0x2f7   : > { %v577_v35 = vmul.f32 1.442695, %v576_v34 }
 0x2f9   : > { %1083 = vpow2.f32 %v577_v35 }
 0x303   : > { %v1084_v36 = vpop.eup %1083 }
 0x304   : > { %v579_v37 = vsel %vm526_vm4, %v1084_v36, 0.0  ;;  %v582_v38 = vpack.c.bf16 %v1084_v36, %v1084_v36 }
 0x305   : > { %580 = vadd.xlane.f32.xlu0 %v579_v37 }
 0x306   : > { %939 = vmatmul.mubr.msk.bf16.vlgmr.msra.gmra.mrb[8].mxu0 %vm526_vm4, %v582_v38 }
 0x392   : > { %v581_v41 = vpop.xlane.xlu0 %580 }
 0x393   : > { %1085 = vrcp.f32 %v581_v41 }
 0x39d   : > { %v1086_v42 = vpop.eup %1085 }
 0x3d9   : > { %v624_v43 = vpop.f32.mrb[8].mxu0 }
 0x3da   : > { %v631_v44 = vmul.f32 %v1086_v42, %v624_v43  ;;  %v940_v45 = vpop.f32.mrb[9].mxu0 }
 0x3db   : > { %v627_v46 = vpop.f32.mrb[10].mxu0 }
 0x3dc   : > { %v633_v47 = vpack.c.bf16 %v631_v44, %v631_v44  ;;  %v941_v48 = vpop.f32.mrb[11].mxu0 }
 0x3de   : > { %945 = vmatmul.mubr.msk.bf16.vlgmr.msra.gmra.mrb[8].mxu1 %vm526_vm4, %v633_v47 }
 0x4ae   : > { %686 = sbr.rel (%p884_p9) target bundleno = 1215 (0x4bf), region = 60 }
 0x4b1   : > { %v675_v50 = vpop.f32.mrb[8].mxu1 }
 0x4b2   : > { %v681_v51 = vadd.f32 %v675_v50, %v632_v49  ;;  %v946_v52 = vpop.f32.mrb[9].mxu1 }
 0x4b3   : > { %v678_v53 = vpop.f32.mrb[10].mxu1 }
 0x4b4   : > { %682 = vst.msk [vmem:[#allocation2] sm:$0xff] %vm365_vm3, %v681_v51  ;;  %v947_v54 = vpop.f32.mrb[11].mxu1 }
 0x4bb   : > { %v687_v55 = vld [vmem:[#allocation2] sm:$0xff] }
 0x4bc   : > { %v695_v57 = vadd.f32 %v885_v56, %v687_v55 }
 0x4be   : > { %696 = vst.msk [vmem:[%s1603_s6] sm:$0xff] %vm365_vm3, %v695_v57 }
 0x4bf PF: > { %s887_s26 = sshll.u32 %s1289_s22, 7  ;;  %s711_s11 = sshll.u32 %s1603_s6, 4  ;;  %s712_s11 = int_to_ptr.vmem [resolvable:$true] %s711_s11 }
 0x4c0   : > { %s1639_s3 = scalar_lea.hbm %s1701_s4, %s887_s26  ;;  %s698_s21 = scalar_lea.sflag [#allocation6], %s1580_s28 }
 0x4c1   : > { %s1171_s7 = scalar_lea.vmem %s712_s11, 128  ;;  %p1748_p3 = scmp.ne.s32.totalorder %s1732_s14, 0 }
 0x4c2   : > { %p1172_p1 = scmp.ne.s32.totalorder %s712_s11, %s1171_s7  ;;  %s1314_s29 = smov [#allocation12]  }
 0x4c3   : > { %s1175_s27 = sshll.u32 %s1314_s29, 4  ;;  %s1176_s27 = int_to_ptr.vmem [resolvable:$false] %s1175_s27 }
 0x4c4   : > { %p1173_p12 = pnand %p1172_p1, %p1748_p3  ;;  %s1177_s10 = scalar_lea.vmem %s1176_s27, 256 }
 0x4c5   : > { %p1178_p6 = scmp.lt.s32.totalorder %s712_s11, %s1176_s27  ;;  %p1179_p10 = scmp.lt.s32.totalorder %s1177_s10, %s1171_s7 }
 0x4c6   : > { %p1174_p2 = pneg %p1173_p12 }
 0x4c7   : > { %p1180_p4 = por %p1179_p10, %p1178_p6 }
 0x4c9   : > { %p1181_p7 = pnand %p1180_p4, %p1174_p2 }
 0x4cb   : > { %1184 = shalt.err (!%p1181_p7)
}
 0x4cc   : > { %s1185_s22 = scalar_lea.hbm %s1639_s3, 128  ;;  %s1189_s0 = scalar_lea.hbm %s1701_s4, 256 }
 0x4cd   : > { %p1186_p11 = scmp.ne.s32.totalorder %s1639_s3, %s1185_s22  ;;  %p1190_p5 = scmp.lt.u32.totalorder %s1639_s3, %s1701_s4 }
 0x4ce   : > { %p1191_p8 = scmp.lt.u32.totalorder %s1189_s0, %s1185_s22  ;;  %p1193_p1 = scmp.lt.u32.totalorder %s1185_s22, %s1639_s3 }
 0x4cf   : > { %p1187_p13 = pnand %p1186_p11, %p1748_p3 }
 0x4d0   : > { %p1192_p9 = por %p1191_p8, %p1190_p5 }
 0x4d1   : > { %p1188_p0 = pneg %p1187_p13 }
 0x4d2   : > { %p1194_p12 = por %p1193_p1, %p1192_p9 }
 0x4d4   : > { %p1195_p2 = pnand %p1194_p12, %p1188_p0 }
 0x4d6   : > { %1198 = shalt.err (!%p1195_p2)
}
 0x4d7   : > { %967 = dma.vmem_to_hbm [thread:$0]  (%p1748_p3), %s712_s11, 128, %s1639_s3, %s698_s21  }
 0x4d8 PF: > { %s1749_s12 = sld [smem:[#allocation20_spill]]  ;;  %s1750_s30 = sld [smem:[#allocation27_spill]] }
 0x4d9   : > { %p979_p6 = scmp.ge.s32.totalorder %s1301_s25, 2 }
 0x4de   : > { %s723_s15 = sand.u32 1, %s1749_s12   ;;  %p1751_p10 = scmp.ne.s32.totalorder %s1750_s30, 0 }
 0x4df   : > { %s724_s20 = scalar_lea.sflag [#allocation6], %s723_s15 }
 0x4e0   : > { %p974_p4 = pnand %p979_p6, %p1751_p10 }
 0x4e2   : > { %1256 = dma.done.wait (!%p974_p4), %s724_s20, 128  }
 0x4e3   : > { %1258 = vsyncadd (!%p974_p4), %s724_s20, 4294967168  ;;  %s24_s25 = sadd.s32 1, %s1301_s25   ;;  %s1752_s24 = sld [smem:[#allocation25_spill]] }
 0x4e4   : > { %p21_p7 = scmp.ge.s32.totalorder %s24_s25, 10   ;;  %s1753_s14 = sld [smem:[#allocation21_spill]] }
 0x4e5   : > { %s1754_s20 = sld [smem:[#allocation26_spill]]  ;;  %s1755_s22 = sld [smem:[#allocation22_spill]] }
 0x4e6   : > { %s1756_s8 = sld [smem:[#allocation23_spill]]  ;;  %s1757_s6 = sld [smem:[#allocation24_spill]] }
 0x4e7   : > { %s1758_s15 = smov %s1265_s16  ;;  %s1759_s16 = smov %s1269_s17 }
 0x4e8   : > { %s1761_s18 = smov %s1277_s19  ;;  %s1763_s21 = smov %s1293_s23 }
 0x4e9   : > { %s1760_s17 = smov %s1752_s24  ;;  %23 = sbr.rel (!%p21_p7) target bundleno = 16 (0x10), region = 124 }
 0x4ea   : > { %s1762_s19 = smov %s1753_s14 }
 0x4ec   : > { %s1764_s23 = smov %s1756_s8  ;;  %s1765_s24 = smov %s1757_s6 }
 0x4f0   :  { %729 = vsyncpa [#allocation5], 1 }
 0x4f1   :  { %731 = vsyncpa [#allocation5 + $0x1], 1 }
 0x4f2   :  { %732 = vsyncpa [#allocation8], 1 }
 0x4f3   :  { %734 = vsyncpa [#allocation8 + $0x1], 1 }
 0x4f4   :  { %735 = vsyncpa [#allocation11], 1 }
 0x4f5   :  { %736 = vsyncpa [#allocation6], 1 }
 0x4f6   :  { %738 = vsyncpa [#allocation6 + $0x1], 1 }

</bundles_post_ra>
